<compile_context>
chip_gen: v7x
topology: tpu7x:2x2x1
jax: 0.10.0
libtpu: 0.0.40
codegen_flags: <defaults>
</compile_context>

<pallas_src>
import jax
import jax.numpy as jnp
from jax.experimental import pallas as pl
from jax.experimental.pallas import tpu as pltpu

EPS = 1e-5
_VMEM_LIMIT_BYTES = 48 * 1024 * 1024  # safe on v5e/v6e (128 MiB) and v7x (64 MiB physical)


# ---------------------------------------------------------------------------
# Pallas kernels
# ---------------------------------------------------------------------------
def project_kernel(x_ref, wl_ref, wr_ref, xl_ref, xr_ref):
    """Per-layer feature projections: xl = x @ Wl^T, xr = x @ Wr^T (bf16 MXU, f32 accumulate)."""
    x = x_ref[...]
    xl_ref[...] = jnp.dot(x, wl_ref[...],
                          preferred_element_type=jnp.float32).astype(xl_ref.dtype)
    xr_ref[...] = jnp.dot(x, wr_ref[...],
                          preferred_element_type=jnp.float32).astype(xr_ref.dtype)


def agg_hidden_kernel(adj_ref, xl_ref, xr_ref, dinv_ref, scale_ref, shift_ref,
                      o_ref, acc_ref):
    """Tiled adj @ xl reduction + epilogue (mean-scale, root add, folded BN+bias, ReLU)."""
    k = pl.program_id(1)

    @pl.when(k == 0)
    def _():
        acc_ref[...] = jnp.zeros_like(acc_ref)

    acc_ref[...] += jnp.dot(adj_ref[...], xl_ref[...],
                            preferred_element_type=jnp.float32)

    @pl.when(k == pl.num_programs(1) - 1)
    def _():
        h = acc_ref[...] * dinv_ref[...] + xr_ref[...].astype(jnp.float32)
        h = h * scale_ref[...] + shift_ref[...]          # BN(eval) + conv bias (pre-folded)
        o_ref[...] = jnp.maximum(h, 0.0).astype(o_ref.dtype)   # ReLU; dropout=identity (eval)


def agg_final_kernel(adj_ref, xl_ref, xr_ref, dinv_ref, b_ref, o_ref, acc_ref):
    """Tiled adj @ xl reduction + epilogue (mean-scale, root add, bias, log_softmax)."""
    k = pl.program_id(1)

    @pl.when(k == 0)
    def _():
        acc_ref[...] = jnp.zeros_like(acc_ref)

    acc_ref[...] += jnp.dot(adj_ref[...], xl_ref[...],
                            preferred_element_type=jnp.float32)

    @pl.when(k == pl.num_programs(1) - 1)
    def _():
        h = acc_ref[...] * dinv_ref[...] + xr_ref[...].astype(jnp.float32) + b_ref[...]
        # numerically stable log_softmax (padded lanes carry bias=-1e30 -> exp underflows to 0)
        m = jnp.max(h, axis=-1, keepdims=True)
        z = h - m
        lse = jnp.log(jnp.sum(jnp.exp(z), axis=-1, keepdims=True))
        o_ref[...] = (z - lse).astype(o_ref.dtype)


# ---------------------------------------------------------------------------
# Wrappers
# ---------------------------------------------------------------------------
def _pick_tile(n):
    """Largest tile <=512 that divides n and respects (8,128)/bf16 tiling; full axis if n small."""
    if n <= 512:
        return n
    for t in (512, 256, 128):
        if n % t == 0:
            return t
    return n  # TODO(synk): pad N to a multiple of 128 for very large, non-divisible node counts.


def sage_project(x_bf16, wl_t_bf16, wr_t_bf16):
    n, f_in = x_bf16.shape
    f_out = wl_t_bf16.shape[1]
    tm = _pick_tile(n)
    return pl.pallas_call(
        project_kernel,
        out_shape=(jax.ShapeDtypeStruct((n, f_out), jnp.bfloat16),
                   jax.ShapeDtypeStruct((n, f_out), jnp.bfloat16)),
        grid=(n // tm,),
        in_specs=[pl.BlockSpec((tm, f_in), lambda i: (i, 0)),
                  pl.BlockSpec((f_in, f_out), lambda i: (0, 0)),
                  pl.BlockSpec((f_in, f_out), lambda i: (0, 0))],
        out_specs=(pl.BlockSpec((tm, f_out), lambda i: (i, 0)),
                   pl.BlockSpec((tm, f_out), lambda i: (i, 0))),
        compiler_params=pltpu.CompilerParams(
            dimension_semantics=("parallel",),
            vmem_limit_bytes=_VMEM_LIMIT_BYTES),
    )(x_bf16, wl_t_bf16, wr_t_bf16)


def sage_hidden_layer(adj_bf16, xl, xr, dinv, scale, shift):
    n = adj_bf16.shape[0]
    f_out = xl.shape[1]
    tm = _pick_tile(n)
    tk = _pick_tile(n)
    return pl.pallas_call(
        agg_hidden_kernel,
        out_shape=jax.ShapeDtypeStruct((n, f_out), jnp.bfloat16),
        grid=(n // tm, n // tk),
        in_specs=[pl.BlockSpec((tm, tk), lambda i, k: (i, k)),       # adj tile
                  pl.BlockSpec((tk, f_out), lambda i, k: (k, 0)),    # xl (aggregated operand)
                  pl.BlockSpec((tm, f_out), lambda i, k: (i, 0)),    # xr (root projection)
                  pl.BlockSpec((tm, 1), lambda i, k: (i, 0)),        # deg_inv
                  pl.BlockSpec((1, f_out), lambda i, k: (0, 0)),     # folded BN scale
                  pl.BlockSpec((1, f_out), lambda i, k: (0, 0))],    # folded BN shift (+bias)
        out_specs=pl.BlockSpec((tm, f_out), lambda i, k: (i, 0)),
        scratch_shapes=[pltpu.VMEM((tm, f_out), jnp.float32)],
        compiler_params=pltpu.CompilerParams(
            dimension_semantics=("parallel", "arbitrary"),
            vmem_limit_bytes=_VMEM_LIMIT_BYTES),
    )(adj_bf16, xl, xr, dinv, scale, shift)


def sage_final_layer(adj_bf16, xl, xr, dinv, bias_pad):
    n = adj_bf16.shape[0]
    f_pad = xl.shape[1]  # multiple of 128 -> lane-dense output stores
    tm = _pick_tile(n)
    tk = _pick_tile(n)
    return pl.pallas_call(
        agg_final_kernel,
        out_shape=jax.ShapeDtypeStruct((n, f_pad), jnp.float32),
        grid=(n // tm, n // tk),
        in_specs=[pl.BlockSpec((tm, tk), lambda i, k: (i, k)),
                  pl.BlockSpec((tk, f_pad), lambda i, k: (k, 0)),
                  pl.BlockSpec((tm, f_pad), lambda i, k: (i, 0)),
                  pl.BlockSpec((tm, 1), lambda i, k: (i, 0)),
                  pl.BlockSpec((1, f_pad), lambda i, k: (0, 0))],
        out_specs=pl.BlockSpec((tm, f_pad), lambda i, k: (i, 0)),
        scratch_shapes=[pltpu.VMEM((tm, f_pad), jnp.float32)],
        compiler_params=pltpu.CompilerParams(
            dimension_semantics=("parallel", "arbitrary"),
            vmem_limit_bytes=_VMEM_LIMIT_BYTES),
    )(adj_bf16, xl, xr, dinv, bias_pad)


# ---------------------------------------------------------------------------
# Parameters (eval mode: BN running stats; dropout identity)
# ---------------------------------------------------------------------------
def init_params(key, in_channels, hidden_channels, out_channels, num_layers):
    dims = [in_channels] + [hidden_channels] * (num_layers - 1) + [out_channels]
    params = []
    for li in range(num_layers):
        f_in, f_out = dims[li], dims[li + 1]
        key, k1, k2, k3 = jax.random.split(key, 4)
        layer = {
            # weights pre-transposed to [F_in, F_out] for x @ W
            "wl_t": jax.random.normal(k1, (f_in, f_out), jnp.float32) * 0.1,
            "wr_t": jax.random.normal(k2, (f_in, f_out), jnp.float32) * 0.1,
            "b": jax.random.normal(k3, (1, f_out), jnp.float32) * 0.01,
        }
        if li < num_layers - 1:
            key, k4, k5, k6, k7 = jax.random.split(key, 5)
            layer["gamma"] = 1.0 + 0.05 * jax.random.normal(k4, (1, f_out), jnp.float32)
            layer["beta"] = 0.05 * jax.random.normal(k5, (1, f_out), jnp.float32)
            layer["running_mean"] = 0.1 * jax.random.normal(k6, (1, f_out), jnp.float32)
            layer["running_var"] = 1.0 + 0.1 * jax.random.uniform(k7, (1, f_out), jnp.float32)
        params.append(layer)
    return params


# ---------------------------------------------------------------------------
# Forward pass (inference semantics of the PyTorch module)
# ---------------------------------------------------------------------------
@jax.jit
def sage_ogb_forward(x, adj, params):
    # adjacency stays un-normalized in HBM (bf16, exact for 0/1 entries);
    # mean aggregation is applied per-row via deg_inv in the kernel epilogue.
    adj_bf16 = adj.astype(jnp.bfloat16)
    deg = jnp.sum(adj, axis=1, keepdims=True)
    dinv = 1.0 / jnp.maximum(deg, 1.0)                      # [N, 1] f32

    h = x.astype(jnp.bfloat16)

    # hidden layers: SAGEConv + BN(eval) + ReLU  (dropout is identity in eval mode)
    # TODO(synk): training-mode dropout / BN batch statistics not implemented (eval path only).
    # TODO(synk): adj is re-read from HBM once per layer; for small graphs a fully fused
    #             multi-layer kernel keeping adj in VMEM would cut adjacency traffic ~num_layers x.
    for layer in params[:-1]:
        scale = layer["gamma"] / jnp.sqrt(layer["running_var"] + EPS)
        shift = layer["beta"] - layer["running_mean"] * scale + layer["b"] * scale
        xl, xr = sage_project(h,
                              layer["wl_t"].astype(jnp.bfloat16),
                              layer["wr_t"].astype(jnp.bfloat16))
        h = sage_hidden_layer(adj_bf16, xl, xr, dinv, scale, shift)

    # final layer: SAGEConv + log_softmax, computed on a lane-dense (multiple of 128) slab
    last = params[-1]
    out_c = last["wl_t"].shape[1]
    f_pad = ((out_c + 127) // 128) * 128
    pad = f_pad - out_c
    wl_p = jnp.pad(last["wl_t"], ((0, 0), (0, pad)))
    wr_p = jnp.pad(last["wr_t"], ((0, 0), (0, pad)))
    b_p = jnp.pad(last["b"], ((0, 0), (0, pad)), constant_values=-1e30)
    xl, xr = sage_project(h, wl_p.astype(jnp.bfloat16), wr_p.astype(jnp.bfloat16))
    logp = sage_final_layer(adj_bf16, xl, xr, dinv, b_p)
    return logp[:, :out_c]


# ---------------------------------------------------------------------------
if __name__ == "__main__":
    key = jax.random.PRNGKey(0)

    # small shapes consistent with the module
    num_nodes = 64
    in_channels = 32
    hidden_channels = 32
    out_channels = 16
    num_layers = 3
    dropout = 0.5  # unused in eval mode

    key, kx, ka, kp = jax.random.split(key, 4)
    x = jax.random.normal(kx, (num_nodes, in_channels), jnp.float32)
    adj = (jax.random.uniform(ka, (num_nodes, num_nodes)) < 0.1).astype(jnp.float32)

    params = init_params(kp, in_channels, hidden_channels, out_channels, num_layers)

    out = sage_ogb_forward(x, adj, params)
    out = jax.block_until_ready(out)

    # sanity: log_softmax rows should sum (in prob space) to ~1
    row_prob_sum = jnp.exp(out).sum(axis=-1)
    assert out.shape == (num_nodes, out_channels)
    assert bool(jnp.all(jnp.abs(row_prob_sum - 1.0) < 1e-4))

    print("KERNEL_OK")
</pallas_src>

<mosaic_0001>
module attributes {stable_mosaic.version = 11 : i64} {
  func.func @project_kernel(%arg0: i32, %arg1: memref<64x32xbf16, #tpu.memory_space<vmem>>, %arg2: memref<32x32xbf16, #tpu.memory_space<vmem>>, %arg3: memref<32x32xbf16, #tpu.memory_space<vmem>>, %arg4: memref<64x32xbf16, #tpu.memory_space<vmem>>, %arg5: memref<64x32xbf16, #tpu.memory_space<vmem>>) attributes {dimension_semantics = [#tpu.dimension_semantics<parallel>], iteration_bounds = array<i64: 1>, scalar_prefetch = 0 : i64, scratch_operands = 0 : i64, tpu.core_type = #tpu.core_type<tc>, window_params = [{transform_indices = @transform_0, window_bounds = array<i64: 64, 32>}, {pipeline_mode = #tpu.pipeline_mode<synchronous>, transform_indices = @transform_1, window_bounds = array<i64: 32, 32>}, {pipeline_mode = #tpu.pipeline_mode<synchronous>, transform_indices = @transform_2, window_bounds = array<i64: 32, 32>}, {transform_indices = @transform_3, window_bounds = array<i64: 64, 32>}, {transform_indices = @transform_4, window_bounds = array<i64: 64, 32>}]} {
    %c0 = arith.constant 0 : index
    %c0_0 = arith.constant 0 : index
    %0 = vector.load %arg1[%c0, %c0_0] : memref<64x32xbf16, #tpu.memory_space<vmem>>, vector<64x32xbf16>
    %c0_1 = arith.constant 0 : index
    %c0_2 = arith.constant 0 : index
    %1 = vector.load %arg2[%c0_1, %c0_2] : memref<32x32xbf16, #tpu.memory_space<vmem>>, vector<32x32xbf16>
    %cst = arith.constant dense<0.000000e+00> : vector<64x32xf32>
    %2 = tpu.matmul %0, %1, %cst {dimension_numbers = #tpu.dot_dimension_numbers<[1], [0], [0], [1], [0, 0, 1, 1], [], []>} : vector<64x32xbf16>, vector<32x32xbf16>, vector<64x32xf32> -> vector<64x32xf32>
    %3 = arith.truncf %2 : vector<64x32xf32> to vector<64x32xbf16>
    %c0_3 = arith.constant 0 : index
    %c0_4 = arith.constant 0 : index
    %4 = vector.load %arg4[%c0_3, %c0_4] : memref<64x32xbf16, #tpu.memory_space<vmem>>, vector<64x32xbf16>
    tpu.vector_store %arg4[%c0_3, %c0_4], %3 {strides = array<i32>} : memref<64x32xbf16, #tpu.memory_space<vmem>>, vector<64x32xbf16>,
    %c0_5 = arith.constant 0 : index
    %c0_6 = arith.constant 0 : index
    %5 = vector.load %arg3[%c0_5, %c0_6] : memref<32x32xbf16, #tpu.memory_space<vmem>>, vector<32x32xbf16>
    %cst_7 = arith.constant dense<0.000000e+00> : vector<64x32xf32>
    %6 = tpu.matmul %0, %5, %cst_7 {dimension_numbers = #tpu.dot_dimension_numbers<[1], [0], [0], [1], [0, 0, 1, 1], [], []>} : vector<64x32xbf16>, vector<32x32xbf16>, vector<64x32xf32> -> vector<64x32xf32>
    %7 = arith.truncf %6 : vector<64x32xf32> to vector<64x32xbf16>
    %c0_8 = arith.constant 0 : index
    %c0_9 = arith.constant 0 : index
    %8 = vector.load %arg5[%c0_8, %c0_9] : memref<64x32xbf16, #tpu.memory_space<vmem>>, vector<64x32xbf16>
    tpu.vector_store %arg5[%c0_8, %c0_9], %7 {strides = array<i32>} : memref<64x32xbf16, #tpu.memory_space<vmem>>, vector<64x32xbf16>,
    return
  }
  func.func @transform_0(%arg0: i32) -> (i32, i32) {
    %c0_i32 = arith.constant 0 : i32
    %c0_i32_0 = arith.constant 0 : i32
    return %arg0, %c0_i32 : i32, i32
  }
  func.func @transform_1(%arg0: i32) -> (i32, i32) {
    %c0_i32 = arith.constant 0 : i32
    %c0_i32_0 = arith.constant 0 : i32
    %c0_i32_1 = arith.constant 0 : i32
    return %c0_i32, %c0_i32_0 : i32, i32
  }
  func.func @transform_2(%arg0: i32) -> (i32, i32) {
    %c0_i32 = arith.constant 0 : i32
    %c0_i32_0 = arith.constant 0 : i32
    %c0_i32_1 = arith.constant 0 : i32
    return %c0_i32, %c0_i32_0 : i32, i32
  }
  func.func @transform_3(%arg0: i32) -> (i32, i32) {
    %c0_i32 = arith.constant 0 : i32
    %c0_i32_0 = arith.constant 0 : i32
    return %arg0, %c0_i32 : i32, i32
  }
  func.func @transform_4(%arg0: i32) -> (i32, i32) {
    %c0_i32 = arith.constant 0 : i32
    %c0_i32_0 = arith.constant 0 : i32
    return %arg0, %c0_i32 : i32, i32
  }
}

module attributes {stable_mosaic.version = 11 : i64} {
  func.func @agg_hidden_kernel(%arg0: i32, %arg1: i32, %arg2: memref<64x64xbf16, #tpu.memory_space<vmem>>, %arg3: memref<64x32xbf16, #tpu.memory_space<vmem>>, %arg4: memref<64x32xbf16, #tpu.memory_space<vmem>>, %arg5: memref<64x1xf32, #tpu.memory_space<vmem>>, %arg6: memref<1x32xf32, #tpu.memory_space<vmem>>, %arg7: memref<1x32xf32, #tpu.memory_space<vmem>>, %arg8: memref<64x32xbf16, #tpu.memory_space<vmem>>, %arg9: memref<64x32xf32, #tpu.memory_space<vmem>>) attributes {dimension_semantics = [#tpu.dimension_semantics<parallel>, #tpu.dimension_semantics<arbitrary>], iteration_bounds = array<i64: 1, 1>, scalar_prefetch = 0 : i64, scratch_operands = 1 : i64, tpu.core_type = #tpu.core_type<tc>, window_params = [{transform_indices = @transform_0, window_bounds = array<i64: 64, 64>}, {transform_indices = @transform_1, window_bounds = array<i64: 64, 32>}, {transform_indices = @transform_2, window_bounds = array<i64: 64, 32>}, {transform_indices = @transform_3, window_bounds = array<i64: 64, 1>}, {pipeline_mode = #tpu.pipeline_mode<synchronous>, transform_indices = @transform_4, window_bounds = array<i64: 1, 32>}, {pipeline_mode = #tpu.pipeline_mode<synchronous>, transform_indices = @transform_5, window_bounds = array<i64: 1, 32>}, {transform_indices = @transform_6, window_bounds = array<i64: 64, 32>}]} {
    %c0_i32 = arith.constant 0 : i32
    %0 = arith.cmpi eq, %arg1, %c0_i32 : i32
    %1 = arith.extui %0 : i1 to i32
    %c0_i32_0 = arith.constant 0 : i32
    %2 = arith.cmpi ne, %1, %c0_i32_0 : i32
    scf.if %2 {
      %cst_10 = arith.constant 0.000000e+00 : f32
      %12 = vector.broadcast %cst_10 : f32 to vector<64x32xf32>
      %c0_11 = arith.constant 0 : index
      %c0_12 = arith.constant 0 : index
      %13 = vector.load %arg9[%c0_11, %c0_12] : memref<64x32xf32, #tpu.memory_space<vmem>>, vector<64x32xf32>
      tpu.vector_store %arg9[%c0_11, %c0_12], %12 {strides = array<i32>} : memref<64x32xf32, #tpu.memory_space<vmem>>, vector<64x32xf32>,
    } else {
    }
    %c0 = arith.constant 0 : index
    %c0_1 = arith.constant 0 : index
    %3 = vector.load %arg9[%c0, %c0_1] : memref<64x32xf32, #tpu.memory_space<vmem>>, vector<64x32xf32>
    %c0_2 = arith.constant 0 : index
    %c0_3 = arith.constant 0 : index
    %4 = vector.load %arg2[%c0_2, %c0_3] : memref<64x64xbf16, #tpu.memory_space<vmem>>, vector<64x64xbf16>
    %c0_4 = arith.constant 0 : index
    %c0_5 = arith.constant 0 : index
    %5 = vector.load %arg3[%c0_4, %c0_5] : memref<64x32xbf16, #tpu.memory_space<vmem>>, vector<64x32xbf16>
    %cst = arith.constant dense<0.000000e+00> : vector<64x32xf32>
    %6 = tpu.matmul %4, %5, %cst {dimension_numbers = #tpu.dot_dimension_numbers<[1], [0], [0], [1], [0, 0, 1, 1], [], []>} : vector<64x64xbf16>, vector<64x32xbf16>, vector<64x32xf32> -> vector<64x32xf32>
    %7 = arith.addf %3, %6 : vector<64x32xf32>
    %c0_6 = arith.constant 0 : index
    %c0_7 = arith.constant 0 : index
    %8 = vector.load %arg9[%c0_6, %c0_7] : memref<64x32xf32, #tpu.memory_space<vmem>>, vector<64x32xf32>
    tpu.vector_store %arg9[%c0_6, %c0_7], %7 {strides = array<i32>} : memref<64x32xf32, #tpu.memory_space<vmem>>, vector<64x32xf32>,
    %c0_i32_8 = arith.constant 0 : i32
    %9 = arith.cmpi eq, %arg1, %c0_i32_8 : i32
    %10 = arith.extui %9 : i1 to i32
    %c0_i32_9 = arith.constant 0 : i32
    %11 = arith.cmpi ne, %10, %c0_i32_9 : i32
    scf.if %11 {
      %c0_10 = arith.constant 0 : index
      %c0_11 = arith.constant 0 : index
      %12 = vector.load %arg9[%c0_10, %c0_11] : memref<64x32xf32, #tpu.memory_space<vmem>>, vector<64x32xf32>
      %c0_12 = arith.constant 0 : index
      %c0_13 = arith.constant 0 : index
      %13 = vector.load %arg5[%c0_12, %c0_13] : memref<64x1xf32, #tpu.memory_space<vmem>>, vector<64x1xf32>
      %14 = vector.broadcast %13 : vector<64x1xf32> to vector<64x32xf32>
      %15 = arith.mulf %12, %14 : vector<64x32xf32>
      %c0_14 = arith.constant 0 : index
      %c0_15 = arith.constant 0 : index
      %16 = vector.load %arg4[%c0_14, %c0_15] : memref<64x32xbf16, #tpu.memory_space<vmem>>, vector<64x32xbf16>
      %17 = arith.extf %16 : vector<64x32xbf16> to vector<64x32xf32>
      %18 = arith.addf %15, %17 : vector<64x32xf32>
      %c0_16 = arith.constant 0 : index
      %c0_17 = arith.constant 0 : index
      %19 = vector.load %arg6[%c0_16, %c0_17] : memref<1x32xf32, #tpu.memory_space<vmem>>, vector<1x32xf32>
      %20 = vector.broadcast %19 : vector<1x32xf32> to vector<64x32xf32>
      %21 = arith.mulf %18, %20 : vector<64x32xf32>
      %c0_18 = arith.constant 0 : index
      %c0_19 = arith.constant 0 : index
      %22 = vector.load %arg7[%c0_18, %c0_19] : memref<1x32xf32, #tpu.memory_space<vmem>>, vector<1x32xf32>
      %23 = vector.broadcast %22 : vector<1x32xf32> to vector<64x32xf32>
      %24 = arith.addf %21, %23 : vector<64x32xf32>
      %cst_20 = arith.constant 0.000000e+00 : f32
      %25 = vector.broadcast %cst_20 : f32 to vector<64x32xf32>
      %26 = arith.maximumf %24, %25 : vector<64x32xf32>
      %27 = arith.truncf %26 : vector<64x32xf32> to vector<64x32xbf16>
      %c0_21 = arith.constant 0 : index
      %c0_22 = arith.constant 0 : index
      %28 = vector.load %arg8[%c0_21, %c0_22] : memref<64x32xbf16, #tpu.memory_space<vmem>>, vector<64x32xbf16>
      tpu.vector_store %arg8[%c0_21, %c0_22], %27 {strides = array<i32>} : memref<64x32xbf16, #tpu.memory_space<vmem>>, vector<64x32xbf16>,
    } else {
    }
    return
  }
  func.func @transform_0(%arg0: i32, %arg1: i32) -> (i32, i32) {
    %c0_i32 = arith.constant 0 : i32
    return %arg0, %arg1 : i32, i32
  }
  func.func @transform_1(%arg0: i32, %arg1: i32) -> (i32, i32) {
    %c0_i32 = arith.constant 0 : i32
    %c0_i32_0 = arith.constant 0 : i32
    return %arg1, %c0_i32 : i32, i32
  }
  func.func @transform_2(%arg0: i32, %arg1: i32) -> (i32, i32) {
    %c0_i32 = arith.constant 0 : i32
    %c0_i32_0 = arith.constant 0 : i32
    return %arg0, %c0_i32 : i32, i32
  }
  func.func @transform_3(%arg0: i32, %arg1: i32) -> (i32, i32) {
    %c0_i32 = arith.constant 0 : i32
    %c0_i32_0 = arith.constant 0 : i32
    return %arg0, %c0_i32 : i32, i32
  }
  func.func @transform_4(%arg0: i32, %arg1: i32) -> (i32, i32) {
    %c0_i32 = arith.constant 0 : i32
    %c0_i32_0 = arith.constant 0 : i32
    %c0_i32_1 = arith.constant 0 : i32
    return %c0_i32, %c0_i32_0 : i32, i32
  }
  func.func @transform_5(%arg0: i32, %arg1: i32) -> (i32, i32) {
    %c0_i32 = arith.constant 0 : i32
    %c0_i32_0 = arith.constant 0 : i32
    %c0_i32_1 = arith.constant 0 : i32
    return %c0_i32, %c0_i32_0 : i32, i32
  }
  func.func @transform_6(%arg0: i32, %arg1: i32) -> (i32, i32) {
    %c0_i32 = arith.constant 0 : i32
    %c0_i32_0 = arith.constant 0 : i32
    return %arg0, %c0_i32 : i32, i32
  }
}

module attributes {stable_mosaic.version = 11 : i64} {
  func.func @agg_final_kernel(%arg0: i32, %arg1: i32, %arg2: memref<64x64xbf16, #tpu.memory_space<vmem>>, %arg3: memref<64x128xbf16, #tpu.memory_space<vmem>>, %arg4: memref<64x128xbf16, #tpu.memory_space<vmem>>, %arg5: memref<64x1xf32, #tpu.memory_space<vmem>>, %arg6: memref<1x128xf32, #tpu.memory_space<vmem>>, %arg7: memref<64x128xf32, #tpu.memory_space<vmem>>, %arg8: memref<64x128xf32, #tpu.memory_space<vmem>>) attributes {dimension_semantics = [#tpu.dimension_semantics<parallel>, #tpu.dimension_semantics<arbitrary>], iteration_bounds = array<i64: 1, 1>, scalar_prefetch = 0 : i64, scratch_operands = 1 : i64, tpu.core_type = #tpu.core_type<tc>, window_params = [{transform_indices = @transform_0, window_bounds = array<i64: 64, 64>}, {transform_indices = @transform_1, window_bounds = array<i64: 64, 128>}, {transform_indices = @transform_2, window_bounds = array<i64: 64, 128>}, {transform_indices = @transform_3, window_bounds = array<i64: 64, 1>}, {pipeline_mode = #tpu.pipeline_mode<synchronous>, transform_indices = @transform_4, window_bounds = array<i64: 1, 128>}, {transform_indices = @transform_5, window_bounds = array<i64: 64, 128>}]} {
    %c0_i32 = arith.constant 0 : i32
    %0 = arith.cmpi eq, %arg1, %c0_i32 : i32
    %1 = arith.extui %0 : i1 to i32
    %c0_i32_0 = arith.constant 0 : i32
    %2 = arith.cmpi ne, %1, %c0_i32_0 : i32
    scf.if %2 {
      %cst_10 = arith.constant 0.000000e+00 : f32
      %12 = vector.broadcast %cst_10 : f32 to vector<64x128xf32>
      %c0_11 = arith.constant 0 : index
      %c0_12 = arith.constant 0 : index
      %13 = vector.load %arg8[%c0_11, %c0_12] : memref<64x128xf32, #tpu.memory_space<vmem>>, vector<64x128xf32>
      tpu.vector_store %arg8[%c0_11, %c0_12], %12 {strides = array<i32>} : memref<64x128xf32, #tpu.memory_space<vmem>>, vector<64x128xf32>,
    } else {
    }
    %c0 = arith.constant 0 : index
    %c0_1 = arith.constant 0 : index
    %3 = vector.load %arg8[%c0, %c0_1] : memref<64x128xf32, #tpu.memory_space<vmem>>, vector<64x128xf32>
    %c0_2 = arith.constant 0 : index
    %c0_3 = arith.constant 0 : index
    %4 = vector.load %arg2[%c0_2, %c0_3] : memref<64x64xbf16, #tpu.memory_space<vmem>>, vector<64x64xbf16>
    %c0_4 = arith.constant 0 : index
    %c0_5 = arith.constant 0 : index
    %5 = vector.load %arg3[%c0_4, %c0_5] : memref<64x128xbf16, #tpu.memory_space<vmem>>, vector<64x128xbf16>
    %cst = arith.constant dense<0.000000e+00> : vector<64x128xf32>
    %6 = tpu.matmul %4, %5, %cst {dimension_numbers = #tpu.dot_dimension_numbers<[1], [0], [0], [1], [0, 0, 1, 1], [], []>} : vector<64x64xbf16>, vector<64x128xbf16>, vector<64x128xf32> -> vector<64x128xf32>
    %7 = arith.addf %3, %6 : vector<64x128xf32>
    %c0_6 = arith.constant 0 : index
    %c0_7 = arith.constant 0 : index
    %8 = vector.load %arg8[%c0_6, %c0_7] : memref<64x128xf32, #tpu.memory_space<vmem>>, vector<64x128xf32>
    tpu.vector_store %arg8[%c0_6, %c0_7], %7 {strides = array<i32>} : memref<64x128xf32, #tpu.memory_space<vmem>>, vector<64x128xf32>,
    %c0_i32_8 = arith.constant 0 : i32
    %9 = arith.cmpi eq, %arg1, %c0_i32_8 : i32
    %10 = arith.extui %9 : i1 to i32
    %c0_i32_9 = arith.constant 0 : i32
    %11 = arith.cmpi ne, %10, %c0_i32_9 : i32
    scf.if %11 {
      %c0_10 = arith.constant 0 : index
      %c0_11 = arith.constant 0 : index
      %12 = vector.load %arg8[%c0_10, %c0_11] : memref<64x128xf32, #tpu.memory_space<vmem>>, vector<64x128xf32>
      %c0_12 = arith.constant 0 : index
      %c0_13 = arith.constant 0 : index
      %13 = vector.load %arg5[%c0_12, %c0_13] : memref<64x1xf32, #tpu.memory_space<vmem>>, vector<64x1xf32>
      %14 = vector.broadcast %13 : vector<64x1xf32> to vector<64x128xf32>
      %15 = arith.mulf %12, %14 : vector<64x128xf32>
      %c0_14 = arith.constant 0 : index
      %c0_15 = arith.constant 0 : index
      %16 = vector.load %arg4[%c0_14, %c0_15] : memref<64x128xbf16, #tpu.memory_space<vmem>>, vector<64x128xbf16>
      %17 = arith.extf %16 : vector<64x128xbf16> to vector<64x128xf32>
      %18 = arith.addf %15, %17 : vector<64x128xf32>
      %c0_16 = arith.constant 0 : index
      %c0_17 = arith.constant 0 : index
      %19 = vector.load %arg6[%c0_16, %c0_17] : memref<1x128xf32, #tpu.memory_space<vmem>>, vector<1x128xf32>
      %20 = vector.broadcast %19 : vector<1x128xf32> to vector<64x128xf32>
      %21 = arith.addf %18, %20 : vector<64x128xf32>
      %cst_18 = arith.constant dense<0xFF800000> : vector<64xf32>
      %22 = vector.multi_reduction <maximumf>, %21, %cst_18 [1] : vector<64x128xf32> to vector<64xf32>
      %23 = vector.shape_cast %22 : vector<64xf32> to vector<64x1xf32>
      %24 = vector.broadcast %23 : vector<64x1xf32> to vector<64x128xf32>
      %25 = arith.subf %21, %24 : vector<64x128xf32>
      %26 = math.exp %25 : vector<64x128xf32>
      %cst_19 = arith.constant dense<0.000000e+00> : vector<64xf32>
      %27 = vector.multi_reduction <add>, %26, %cst_19 [1] : vector<64x128xf32> to vector<64xf32>
      %28 = vector.shape_cast %27 : vector<64xf32> to vector<64x1xf32>
      %29 = math.log %28 : vector<64x1xf32>
      %30 = vector.broadcast %29 : vector<64x1xf32> to vector<64x128xf32>
      %31 = arith.subf %25, %30 : vector<64x128xf32>
      %c0_20 = arith.constant 0 : index
      %c0_21 = arith.constant 0 : index
      %32 = vector.load %arg7[%c0_20, %c0_21] : memref<64x128xf32, #tpu.memory_space<vmem>>, vector<64x128xf32>
      tpu.vector_store %arg7[%c0_20, %c0_21], %31 {strides = array<i32>} : memref<64x128xf32, #tpu.memory_space<vmem>>, vector<64x128xf32>,
    } else {
    }
    return
  }
  func.func @transform_0(%arg0: i32, %arg1: i32) -> (i32, i32) {
    %c0_i32 = arith.constant 0 : i32
    return %arg0, %arg1 : i32, i32
  }
  func.func @transform_1(%arg0: i32, %arg1: i32) -> (i32, i32) {
    %c0_i32 = arith.constant 0 : i32
    %c0_i32_0 = arith.constant 0 : i32
    return %arg1, %c0_i32 : i32, i32
  }
  func.func @transform_2(%arg0: i32, %arg1: i32) -> (i32, i32) {
    %c0_i32 = arith.constant 0 : i32
    %c0_i32_0 = arith.constant 0 : i32
    return %arg0, %c0_i32 : i32, i32
  }
  func.func @transform_3(%arg0: i32, %arg1: i32) -> (i32, i32) {
    %c0_i32 = arith.constant 0 : i32
    %c0_i32_0 = arith.constant 0 : i32
    return %arg0, %c0_i32 : i32, i32
  }
  func.func @transform_4(%arg0: i32, %arg1: i32) -> (i32, i32) {
    %c0_i32 = arith.constant 0 : i32
    %c0_i32_0 = arith.constant 0 : i32
    %c0_i32_1 = arith.constant 0 : i32
    return %c0_i32, %c0_i32_0 : i32, i32
  }
  func.func @transform_5(%arg0: i32, %arg1: i32) -> (i32, i32) {
    %c0_i32 = arith.constant 0 : i32
    %c0_i32_0 = arith.constant 0 : i32
    return %arg0, %c0_i32 : i32, i32
  }
}

module attributes {stable_mosaic.version = 11 : i64} {
  func.func @project_kernel(%arg0: i32, %arg1: memref<64x32xbf16, #tpu.memory_space<vmem>>, %arg2: memref<32x128xbf16, #tpu.memory_space<vmem>>, %arg3: memref<32x128xbf16, #tpu.memory_space<vmem>>, %arg4: memref<64x128xbf16, #tpu.memory_space<vmem>>, %arg5: memref<64x128xbf16, #tpu.memory_space<vmem>>) attributes {dimension_semantics = [#tpu.dimension_semantics<parallel>], iteration_bounds = array<i64: 1>, scalar_prefetch = 0 : i64, scratch_operands = 0 : i64, tpu.core_type = #tpu.core_type<tc>, window_params = [{transform_indices = @transform_0, window_bounds = array<i64: 64, 32>}, {pipeline_mode = #tpu.pipeline_mode<synchronous>, transform_indices = @transform_1, window_bounds = array<i64: 32, 128>}, {pipeline_mode = #tpu.pipeline_mode<synchronous>, transform_indices = @transform_2, window_bounds = array<i64: 32, 128>}, {transform_indices = @transform_3, window_bounds = array<i64: 64, 128>}, {transform_indices = @transform_4, window_bounds = array<i64: 64, 128>}]} {
    %c0 = arith.constant 0 : index
    %c0_0 = arith.constant 0 : index
    %0 = vector.load %arg1[%c0, %c0_0] : memref<64x32xbf16, #tpu.memory_space<vmem>>, vector<64x32xbf16>
    %c0_1 = arith.constant 0 : index
    %c0_2 = arith.constant 0 : index
    %1 = vector.load %arg2[%c0_1, %c0_2] : memref<32x128xbf16, #tpu.memory_space<vmem>>, vector<32x128xbf16>
    %cst = arith.constant dense<0.000000e+00> : vector<64x128xf32>
    %2 = tpu.matmul %0, %1, %cst {dimension_numbers = #tpu.dot_dimension_numbers<[1], [0], [0], [1], [0, 0, 1, 1], [], []>} : vector<64x32xbf16>, vector<32x128xbf16>, vector<64x128xf32> -> vector<64x128xf32>
    %3 = arith.truncf %2 : vector<64x128xf32> to vector<64x128xbf16>
    %c0_3 = arith.constant 0 : index
    %c0_4 = arith.constant 0 : index
    %4 = vector.load %arg4[%c0_3, %c0_4] : memref<64x128xbf16, #tpu.memory_space<vmem>>, vector<64x128xbf16>
    tpu.vector_store %arg4[%c0_3, %c0_4], %3 {strides = array<i32>} : memref<64x128xbf16, #tpu.memory_space<vmem>>, vector<64x128xbf16>,
    %c0_5 = arith.constant 0 : index
    %c0_6 = arith.constant 0 : index
    %5 = vector.load %arg3[%c0_5, %c0_6] : memref<32x128xbf16, #tpu.memory_space<vmem>>, vector<32x128xbf16>
    %cst_7 = arith.constant dense<0.000000e+00> : vector<64x128xf32>
    %6 = tpu.matmul %0, %5, %cst_7 {dimension_numbers = #tpu.dot_dimension_numbers<[1], [0], [0], [1], [0, 0, 1, 1], [], []>} : vector<64x32xbf16>, vector<32x128xbf16>, vector<64x128xf32> -> vector<64x128xf32>
    %7 = arith.truncf %6 : vector<64x128xf32> to vector<64x128xbf16>
    %c0_8 = arith.constant 0 : index
    %c0_9 = arith.constant 0 : index
    %8 = vector.load %arg5[%c0_8, %c0_9] : memref<64x128xbf16, #tpu.memory_space<vmem>>, vector<64x128xbf16>
    tpu.vector_store %arg5[%c0_8, %c0_9], %7 {strides = array<i32>} : memref<64x128xbf16, #tpu.memory_space<vmem>>, vector<64x128xbf16>,
    return
  }
  func.func @transform_0(%arg0: i32) -> (i32, i32) {
    %c0_i32 = arith.constant 0 : i32
    %c0_i32_0 = arith.constant 0 : i32
    return %arg0, %c0_i32 : i32, i32
  }
  func.func @transform_1(%arg0: i32) -> (i32, i32) {
    %c0_i32 = arith.constant 0 : i32
    %c0_i32_0 = arith.constant 0 : i32
    %c0_i32_1 = arith.constant 0 : i32
    return %c0_i32, %c0_i32_0 : i32, i32
  }
  func.func @transform_2(%arg0: i32) -> (i32, i32) {
    %c0_i32 = arith.constant 0 : i32
    %c0_i32_0 = arith.constant 0 : i32
    %c0_i32_1 = arith.constant 0 : i32
    return %c0_i32, %c0_i32_0 : i32, i32
  }
  func.func @transform_3(%arg0: i32) -> (i32, i32) {
    %c0_i32 = arith.constant 0 : i32
    %c0_i32_0 = arith.constant 0 : i32
    return %arg0, %c0_i32 : i32, i32
  }
  func.func @transform_4(%arg0: i32) -> (i32, i32) {
    %c0_i32 = arith.constant 0 : i32
    %c0_i32_0 = arith.constant 0 : i32
    return %arg0, %c0_i32 : i32, i32
  }
}

</mosaic_0001>

<bundles_post_ra>
// kernel: sage_ogb_forward.6
= control target key start
LH: loop header
LB: loop body
LE: loop exit
PB: predicated region body
PF: predicated region fallthrough
CT: control target
= control target key end

     0   :  { %vm61_vm0 = vcmask 261120   ;;  %vm171_vm1 = vcmask 257024   ;;  %s522_s1 = inlined_call_operand.vmem [shape: bf16[32,32], index: 1, kind: input, shape index: {}]   ;;  %s523_s2 = inlined_call_operand.vmem [shape: bf16[32,32], index: 2, kind: input, shape index: {}]   ;;  %s524_s0 = inlined_call_operand.vmem [shape: bf16[64,32], index: 0, kind: input, shape index: {}]   ;;  %s525_s3 = inlined_call_operand.vmem [shape: bf16[64,32], index: 3, kind: output, shape index: {0}]   ;;  %s526_s4 = inlined_call_operand.vmem [shape: bf16[64,32], index: 4, kind: output, shape index: {1}]  }
   0x1   :  { %v393_v0 = vld [vmem:[%s522_s1] sm:$0xff]   ;;  %v395_v2 = vld [vmem:[%s522_s1 + $0x8] sm:$0xff]   ;;  %v399_v6 = vld [vmem:[%s524_s0 + $0x10] sm:$0xff]  }
   0x2   :  { %v394_v1 = vld [vmem:[%s523_s2] sm:$0xff]   ;;  %369 = vmatprep.subr.bf16.mxu0 %v393_v0  ;;  %v396_v3 = vld [vmem:[%s523_s2 + $0x8] sm:$0xff]   ;;  %v400_v7 = vld [vmem:[%s524_s0 + $0x18] sm:$0xff]  }
   0x3   :  { %381 = vmatprep.subr.bf16.mxu1 %v394_v1  ;;  %370 = vmatpush3.bf16.msra.mxu0 %v393_v0  ;;  %v397_v4 = vld [vmem:[%s524_s0] sm:$0xff]   ;;  %v398_v5 = vld [vmem:[%s524_s0 + $0x8] sm:$0xff]  }
   0x4   :  { %382 = vmatpush3.bf16.msra.mxu1 %v394_v1  ;;  %371 = vmatprep.subr.bf16.mxu0 %v395_v2 }
   0x5   :  { %383 = vmatprep.subr.bf16.mxu1 %v396_v3  ;;  %373 = vmatprep.mubr.msk.bf16.mxu0 %vm61_vm0, %v397_v4 }
   0x6   :  { %385 = vmatprep.mubr.msk.bf16.mxu1 %vm61_vm0, %v397_v4 }
   0x7   :  { %372 = vmatpush3.bf16.msra.mxu0 %v395_v2 }
   0x8   :  { %384 = vmatpush3.bf16.msra.mxu1 %v396_v3 }
   0xa   :  { %374 = vmatmul.mubr.msk.bf16.vlgmr.msra.gmra.mrb[0].mxu0 %vm61_vm0, %v398_v5 }
   0xb   :  { %386 = vmatmul.mubr.msk.bf16.vlgmr.msra.gmra.mrb[0].mxu1 %vm61_vm0, %v398_v5  ;;  %377 = vmatprep.mubr.msk.bf16.mxu0 %vm61_vm0, %v399_v6 }
   0xc   :  { %389 = vmatprep.mubr.msk.bf16.mxu1 %vm61_vm0, %v399_v6 }
  0x12   :  { %378 = vmatmul.mubr.msk.bf16.gmra.mrb[4].mxu0 %vm61_vm0, %v400_v7 }
  0x13   :  { %390 = vmatmul.mubr.msk.bf16.gmra.mrb[4].mxu1 %vm61_vm0, %v400_v7 }
  0xdd   :  { %v375_v8 = vpop.f32.mrb[0].mxu0 }
  0xde   :  { %v343_v9 = vpack.c.bf16 %v375_v8, %v375_v8  ;;  %v387_v10 = vpop.f32.mrb[0].mxu1  ;;  %v108_v11 = vpop.f32.mrb[1].mxu0 }
  0xdf   :  { %v351_v12 = vpack.c.bf16 %v387_v10, %v387_v10  ;;  %v341_v13 = vpack.c.bf16 %v108_v11, %v108_v11  ;;  %v230_v14 = vpop.f32.mrb[1].mxu1  ;;  %v376_v15 = vpop.f32.mrb[2].mxu0 }
  0xe0   :  { %174 = vst.msk [vmem:[%s525_s3 + $0x8] sm:$0xf] %vm171_vm1, %v343_v9  ;;  %v349_v16 = vpack.c.bf16 %v230_v14, %v230_v14  ;;  %v344_v17 = vpack.c.bf16 %v376_v15, %v376_v15  ;;  %v388_v18 = vpop.f32.mrb[2].mxu1  ;;  %v111_v19 = vpop.f32.mrb[3].mxu0 }
  0xe1   :  { %295 = vst.msk [vmem:[%s526_s4 + $0x8] sm:$0xf] %vm171_vm1, %v351_v12  ;;  %172 = vst.msk [vmem:[%s525_s3] sm:$0xf] %vm171_vm1, %v341_v13  ;;  %v352_v20 = vpack.c.bf16 %v388_v18, %v388_v18  ;;  %v342_v21 = vpack.c.bf16 %v111_v19, %v111_v19  ;;  %v233_v22 = vpop.f32.mrb[3].mxu1 }
  0xe2   :  { %293 = vst.msk [vmem:[%s526_s4] sm:$0xf] %vm171_vm1, %v349_v16  ;;  %175 = vst.msk [vmem:[%s525_s3 + $0xc] sm:$0xf] %vm171_vm1, %v344_v17  ;;  %v350_v23 = vpack.c.bf16 %v233_v22, %v233_v22 }
  0xe3   :  { %296 = vst.msk [vmem:[%s526_s4 + $0xc] sm:$0xf] %vm171_vm1, %v352_v20  ;;  %173 = vst.msk [vmem:[%s525_s3 + $0x4] sm:$0xf] %vm171_vm1, %v342_v21 }
  0xe4   :  { %294 = vst.msk [vmem:[%s526_s4 + $0x4] sm:$0xf] %vm171_vm1, %v350_v23 }
  0xe5   :  { %v379_v24 = vpop.f32.mrb[4].mxu0 }
  0xe6   :  { %v347_v25 = vpack.c.bf16 %v379_v24, %v379_v24  ;;  %v391_v26 = vpop.f32.mrb[4].mxu1  ;;  %v124_v27 = vpop.f32.mrb[5].mxu0 }
  0xe7   :  { %v355_v28 = vpack.c.bf16 %v391_v26, %v391_v26  ;;  %v345_v29 = vpack.c.bf16 %v124_v27, %v124_v27  ;;  %v246_v30 = vpop.f32.mrb[5].mxu1  ;;  %v380_v31 = vpop.f32.mrb[6].mxu0 }
  0xe8   :  { %178 = vst.msk [vmem:[%s525_s3 + $0x18] sm:$0xf] %vm171_vm1, %v347_v25  ;;  %v353_v32 = vpack.c.bf16 %v246_v30, %v246_v30  ;;  %v348_v33 = vpack.c.bf16 %v380_v31, %v380_v31  ;;  %v392_v34 = vpop.f32.mrb[6].mxu1  ;;  %v127_v35 = vpop.f32.mrb[7].mxu0 }
  0xe9   :  { %299 = vst.msk [vmem:[%s526_s4 + $0x18] sm:$0xf] %vm171_vm1, %v355_v28  ;;  %176 = vst.msk [vmem:[%s525_s3 + $0x10] sm:$0xf] %vm171_vm1, %v345_v29  ;;  %v356_v36 = vpack.c.bf16 %v392_v34, %v392_v34  ;;  %v346_v37 = vpack.c.bf16 %v127_v35, %v127_v35  ;;  %v249_v38 = vpop.f32.mrb[7].mxu1 }
  0xea   :  { %297 = vst.msk [vmem:[%s526_s4 + $0x10] sm:$0xf] %vm171_vm1, %v353_v32  ;;  %179 = vst.msk [vmem:[%s525_s3 + $0x1c] sm:$0xf] %vm171_vm1, %v348_v33  ;;  %v354_v39 = vpack.c.bf16 %v249_v38, %v249_v38 }
  0xeb   :  { %300 = vst.msk [vmem:[%s526_s4 + $0x1c] sm:$0xf] %vm171_vm1, %v356_v36  ;;  %177 = vst.msk [vmem:[%s525_s3 + $0x14] sm:$0xf] %vm171_vm1, %v346_v37 }
  0xec   :  { %298 = vst.msk [vmem:[%s526_s4 + $0x14] sm:$0xf] %vm171_vm1, %v354_v39 }

// kernel: sage_ogb_forward.10
= control target key start
LH: loop header
LB: loop body
LE: loop exit
PB: predicated region body
PF: predicated region fallthrough
CT: control target
= control target key end

     0   :  { %vm61_vm0 = vcmask 261120   ;;  %s527_s1 = inlined_call_operand.vmem [shape: bf16[32,128], index: 1, kind: input, shape index: {}]   ;;  %s528_s2 = inlined_call_operand.vmem [shape: bf16[32,128], index: 2, kind: input, shape index: {}]   ;;  %s529_s0 = inlined_call_operand.vmem [shape: bf16[64,32], index: 0, kind: input, shape index: {}]   ;;  %s530_s3 = inlined_call_operand.vmem [shape: bf16[64,128], index: 3, kind: output, shape index: {0}]   ;;  %s531_s4 = inlined_call_operand.vmem [shape: bf16[64,128], index: 4, kind: output, shape index: {1}]  }
   0x1   :  { %v438_v0 = vld [vmem:[%s527_s1] sm:$0xff]   ;;  %v440_v2 = vld [vmem:[%s527_s1 + $0x8] sm:$0xff]   ;;  %v444_v6 = vld [vmem:[%s529_s0 + $0x10] sm:$0xff]  }
   0x2   :  { %v439_v1 = vld [vmem:[%s528_s2] sm:$0xff]   ;;  %414 = vmatprep.subr.bf16.mxu0 %v438_v0  ;;  %v441_v3 = vld [vmem:[%s528_s2 + $0x8] sm:$0xff]   ;;  %v445_v7 = vld [vmem:[%s529_s0 + $0x18] sm:$0xff]  }
   0x3   :  { %426 = vmatprep.subr.bf16.mxu1 %v439_v1  ;;  %415 = vmatpush3.bf16.msra.mxu0 %v438_v0  ;;  %v442_v4 = vld [vmem:[%s529_s0] sm:$0xff]   ;;  %v443_v5 = vld [vmem:[%s529_s0 + $0x8] sm:$0xff]  }
   0x4   :  { %427 = vmatpush3.bf16.msra.mxu1 %v439_v1  ;;  %416 = vmatprep.subr.bf16.mxu0 %v440_v2 }
   0x5   :  { %428 = vmatprep.subr.bf16.mxu1 %v441_v3  ;;  %418 = vmatprep.mubr.msk.bf16.mxu0 %vm61_vm0, %v442_v4 }
   0x6   :  { %430 = vmatprep.mubr.msk.bf16.mxu1 %vm61_vm0, %v442_v4 }
   0x7   :  { %417 = vmatpush3.bf16.msra.mxu0 %v440_v2 }
   0x8   :  { %429 = vmatpush3.bf16.msra.mxu1 %v441_v3 }
   0xa   :  { %419 = vmatmul.mubr.msk.bf16.vlgmr.msra.gmra.mrb[0].mxu0 %vm61_vm0, %v443_v5 }
   0xb   :  { %431 = vmatmul.mubr.msk.bf16.vlgmr.msra.gmra.mrb[0].mxu1 %vm61_vm0, %v443_v5  ;;  %422 = vmatprep.mubr.msk.bf16.mxu0 %vm61_vm0, %v444_v6 }
   0xc   :  { %434 = vmatprep.mubr.msk.bf16.mxu1 %vm61_vm0, %v444_v6 }
  0x12   :  { %423 = vmatmul.mubr.msk.bf16.gmra.mrb[4].mxu0 %vm61_vm0, %v445_v7 }
  0x13   :  { %435 = vmatmul.mubr.msk.bf16.gmra.mrb[4].mxu1 %vm61_vm0, %v445_v7 }
  0xdd   :  { %v420_v8 = vpop.f32.mrb[0].mxu0 }
  0xde   :  { %v432_v9 = vpop.f32.mrb[0].mxu1  ;;  %v108_v10 = vpop.f32.mrb[1].mxu0 }
  0xdf   :  { %v229_v11 = vpop.f32.mrb[1].mxu1  ;;  %v421_v12 = vpop.f32.mrb[2].mxu0 }
  0xe0   :  { %v364_v13 = vpack.c.bf16 %v421_v12, %v420_v8  ;;  %v433_v14 = vpop.f32.mrb[2].mxu1  ;;  %v111_v15 = vpop.f32.mrb[3].mxu0 }
  0xe1   :  { %v384_v16 = vpack.c.bf16 %v433_v14, %v432_v9  ;;  %v359_v17 = vpack.c.bf16 %v111_v15, %v108_v10  ;;  %v232_v18 = vpop.f32.mrb[3].mxu1 }
  0xe2   :  { %396 = vst [vmem:[%s530_s3 + $0x8] sm:$0xff] %v364_v13   ;;  %v379_v19 = vpack.c.bf16 %v232_v18, %v229_v11 }
  0xe3   :  { %399 = vst [vmem:[%s531_s4 + $0x8] sm:$0xff] %v384_v16   ;;  %360 = vst [vmem:[%s530_s3] sm:$0xff] %v359_v17  }
  0xe4   :  { %380 = vst [vmem:[%s531_s4] sm:$0xff] %v379_v19  }
  0xe5   :  { %v424_v20 = vpop.f32.mrb[4].mxu0 }
  0xe6   :  { %v436_v21 = vpop.f32.mrb[4].mxu1  ;;  %v124_v22 = vpop.f32.mrb[5].mxu0 }
  0xe7   :  { %v245_v23 = vpop.f32.mrb[5].mxu1  ;;  %v425_v24 = vpop.f32.mrb[6].mxu0 }
  0xe8   :  { %v374_v25 = vpack.c.bf16 %v425_v24, %v424_v20  ;;  %v437_v26 = vpop.f32.mrb[6].mxu1  ;;  %v127_v27 = vpop.f32.mrb[7].mxu0 }
  0xe9   :  { %v394_v28 = vpack.c.bf16 %v437_v26, %v436_v21  ;;  %v369_v29 = vpack.c.bf16 %v127_v27, %v124_v22  ;;  %v248_v30 = vpop.f32.mrb[7].mxu1 }
  0xea   :  { %398 = vst [vmem:[%s530_s3 + $0x18] sm:$0xff] %v374_v25   ;;  %v389_v31 = vpack.c.bf16 %v248_v30, %v245_v23 }
  0xeb   :  { %401 = vst [vmem:[%s531_s4 + $0x18] sm:$0xff] %v394_v28   ;;  %397 = vst [vmem:[%s530_s3 + $0x10] sm:$0xff] %v369_v29  }
  0xec   :  { %400 = vst [vmem:[%s531_s4 + $0x10] sm:$0xff] %v389_v31  }

// kernel: sage_ogb_forward.11
= control target key start
LH: loop header
LB: loop body
LE: loop exit
PB: predicated region body
PF: predicated region fallthrough
CT: control target
= control target key end

     0   :  { %v500_v1 = vmov 0   ;;  %vm101_vm0 = vcmask 523264   ;;  %s654_s1 = inlined_call_operand.vmem [shape: bf16[64,128], index: 1, kind: input, shape index: {}]   ;;  %s655_s0 = inlined_call_operand.vmem [shape: bf16[64,64], index: 0, kind: input, shape index: {}]   ;;  %s656_s3 = inlined_call_operand.vmem [shape: f32[64,1], index: 3, kind: input, shape index: {}]   ;;  %s657_s2 = inlined_call_operand.vmem [shape: bf16[64,128], index: 2, kind: input, shape index: {}]   ;;  %s658_s4 = inlined_call_operand.vmem [shape: f32[1,128], index: 4, kind: input, shape index: {}]   ;;  %s659_s5 = inlined_call_operand.vmem [shape: f32[64,128], index: 5, kind: output, shape index: {}]  }
   0x1   :  { %v460_v0 = vld [vmem:[%s654_s1] sm:$0xff]   ;;  %459 = vset.pattern.permute.xlu1 %v500_v1  ;;  %458 = vset.pattern.permute.xlu0 %v500_v1  ;;  %v461_v2 = vld [vmem:[%s654_s1 + $0x8] sm:$0xff]   ;;  %v462_v3 = vld [vmem:[%s654_s1 + $0x10] sm:$0xff]  }
   0x2   :  { %433 = vmatprep.subr.bf16.mxu0 %v460_v0  ;;  %449 = vmatprep.subr.bf16.mxu1 %v460_v0  ;;  %v464_v4 = vld [vmem:[%s655_s0] sm:$0xff]   ;;  %v465_v5 = vld [vmem:[%s655_s0 + $0x10] sm:$0xff]   ;;  %v463_v6 = vld [vmem:[%s654_s1 + $0x18] sm:$0xff]  }
   0x3   :  { %434 = vmatpush3.bf16.msra.mxu0 %v460_v0  ;;  %453 = vmatpush3.bf16.msra.mxu1 %v460_v0  ;;  %v208_v7 = vld [vmem:[%s656_s3 + $0x10] sm:$0xff]  ;;  %v206_v8 = vld [vmem:[%s656_s3] sm:$0xff]  ;;  %v209_v9 = vld [vmem:[%s656_s3 + $0x18] sm:$0xff] }
   0x4   :  { %435 = vmatprep.subr.bf16.mxu0 %v461_v2  ;;  %450 = vmatprep.subr.bf16.mxu1 %v461_v2  ;;  %v207_v10 = vld [vmem:[%s656_s3 + $0x8] sm:$0xff]  ;;  %v467_v12 = vld [vmem:[%s655_s0 + $0x18] sm:$0xff]   ;;  %v210_v14 = vld [vmem:[%s656_s3 + $0x20] sm:$0xff] }
   0x5   :  { %441 = vmatprep.mubr.msk.bf16.mxu0 %vm101_vm0, %v464_v4  ;;  %445 = vmatprep.mubr.msk.bf16.mxu1 %vm101_vm0, %v465_v5  ;;  %v466_v11 = vld [vmem:[%s655_s0 + $0x8] sm:$0xff]   ;;  %v213_v15 = vld [vmem:[%s656_s3 + $0x38] sm:$0xff]  ;;  %v212_v16 = vld [vmem:[%s656_s3 + $0x30] sm:$0xff] }
   0x6   :  { %226 = vperm.xlu1 %459, %v208_v7   ;;  %216 = vperm.xlu0 %458, %v206_v8   ;;  %v211_v13 = vld [vmem:[%s656_s3 + $0x28] sm:$0xff]  ;;  %v423_v22 = vld [vmem:[%s657_s2 + $0x10] sm:$0xff]   ;;  %v407_v23 = vld [vmem:[%s657_s2] sm:$0xff]  }
   0x7   :  { %436 = vmatpush3.bf16.msra.mxu0 %v461_v2  ;;  %454 = vmatpush3.bf16.msra.mxu1 %v461_v2  ;;  %v422_v21 = vld [vmem:[%s657_s2 + $0x8] sm:$0xff]   ;;  %v416_v29 = vunpack.c.l.bf16 %v423_v22  ;;  %v408_v32 = vunpack.c.l.bf16 %v407_v23  ;;  %v409_v38 = vunpack.c.h.bf16 %v407_v23  ;;  %v405_v39 = vld [vmem:[%s658_s4] ss:$0 sm:$0xff]  ;;  %v424_v41 = vld [vmem:[%s657_s2 + $0x18] sm:$0xff]   ;;  %v417_v57 = vunpack.c.h.bf16 %v423_v22 }
   0x8   :  { %437 = vmatprep.subr.bf16.mxu0 %v462_v3  ;;  %451 = vmatprep.subr.bf16.mxu1 %v462_v3  ;;  %v412_v26 = vunpack.c.l.bf16 %v422_v21  ;;  %v413_v48 = vunpack.c.h.bf16 %v422_v21  ;;  %v420_v52 = vunpack.c.l.bf16 %v424_v41  ;;  %v421_v63 = vunpack.c.h.bf16 %v424_v41 }
   0xa   :  { %231 = vperm.xlu1 %459, %v209_v9   ;;  %221 = vperm.xlu0 %458, %v207_v10  }
   0xb   :  { %438 = vmatpush3.bf16.msra.mxu0 %v462_v3  ;;  %455 = vmatpush3.bf16.msra.mxu1 %v462_v3 }
   0xc   :  { %439 = vmatprep.subr.bf16.mxu0 %v463_v6  ;;  %452 = vmatprep.subr.bf16.mxu1 %v463_v6 }
   0xe   :  { %241 = vperm.xlu1 %459, %v211_v13   ;;  %236 = vperm.xlu0 %458, %v210_v14  }
   0xf   :  { %440 = vmatpush3.bf16.msra.mxu0 %v463_v6  ;;  %456 = vmatpush3.bf16.msra.mxu1 %v463_v6 }
  0x12   :  { %442 = vmatmul.mubr.msk.bf16.vlgmr.msra.gmra.mrb[0].mxu0 %vm101_vm0, %v466_v11  ;;  %446 = vmatmul.mubr.msk.bf16.vlgmr.msra.gmra.mrb[0].mxu1 %vm101_vm0, %v467_v12 }
  0x13   :  { %251 = vperm.xlu1 %459, %v213_v15   ;;  %246 = vperm.xlu0 %458, %v212_v16  }
  0x85   :  { %v217_v17 = vpop.permute.xlu0 %216  ;;  %v227_v19 = vpop.permute.xlu1 %226 }
  0x89   :  { %v222_v18 = vpop.permute.xlu0 %221  ;;  %v232_v24 = vpop.permute.xlu1 %231 }
  0x8d   :  { %v237_v20 = vpop.permute.xlu0 %236  ;;  %v242_v50 = vpop.permute.xlu1 %241 }
  0x92   :  { %v247_v25 = vpop.permute.xlu0 %246  ;;  %v252_v61 = vpop.permute.xlu1 %251 }
  0xe5   :  { %v443_v27 = vpop.f32.mrb[0].mxu0  ;;  %v447_v28 = vpop.f32.mrb[0].mxu1 }
  0xe6   :  { %v256_v30 = vmul.f32 %v443_v27, %v227_v19  ;;  %v148_v31 = vpop.f32.mrb[1].mxu0  ;;  %v164_v33 = vpop.f32.mrb[1].mxu1  ;;  %v260_v51 = vmul.f32 %v447_v28, %v247_v25 }
  0xe7   :  { %v254_v34 = vmul.f32 %v217_v17, %v148_v31  ;;  %v258_v35 = vmul.f32 %v237_v20, %v164_v33  ;;  %v444_v36 = vpop.f32.mrb[2].mxu0  ;;  %v448_v37 = vpop.f32.mrb[2].mxu1 }
  0xe8   :  { %v280_v40 = vadd.f32 %v412_v26, %v256_v30  ;;  %v151_v42 = vpop.f32.mrb[3].mxu0  ;;  %v167_v43 = vpop.f32.mrb[3].mxu1  ;;  %v257_v47 = vmul.f32 %v444_v36, %v232_v24  ;;  %v284_v59 = vadd.f32 %v420_v52, %v260_v51  ;;  %v261_v62 = vmul.f32 %v448_v37, %v252_v61 }
  0xe9   :  { %v282_v44 = vadd.f32 %v416_v29, %v258_v35  ;;  %v255_v45 = vmul.f32 %v222_v18, %v151_v42  ;;  %v278_v46 = vadd.f32 %v408_v32, %v254_v34  ;;  %v259_v56 = vmul.f32 %v242_v50, %v167_v43 }
  0xea   :  { %v295_v49 = vadd.f32 %v405_v39, %v280_v40  ;;  %v281_v55 = vadd.f32 %v413_v48, %v257_v47  ;;  %v299_v2 = vadd.f32 %v405_v39, %v284_v59  ;;  %v285_v3 = vadd.f32 %v421_v63, %v261_v62 }
  0xeb   :  { %v279_v53 = vadd.f32 %v409_v38, %v255_v45  ;;  %v297_v54 = vadd.f32 %v405_v39, %v282_v44  ;;  %v293_v58 = vadd.f32 %v405_v39, %v278_v46  ;;  %v283_v0 = vadd.f32 %v417_v57, %v259_v56 }
  0xec   :  { %305 = vmax.xlane.f32.xlu0 %v295_v49  ;;  %v296_v1 = vadd.f32 %v405_v39, %v281_v55  ;;  %v300_v5 = vadd.f32 %v405_v39, %v285_v3 }
  0xed   :  { %309 = vmax.xlane.f32.xlu1 %v297_v54  ;;  %v294_v60 = vadd.f32 %v405_v39, %v279_v53  ;;  %v298_v4 = vadd.f32 %v405_v39, %v283_v0 }
  0xf0   :  { %301 = vmax.xlane.f32.xlu0 %v293_v58 }
  0xf1   :  { %303 = vmax.xlane.f32.xlu1 %v294_v60 }
  0xf4   :  { %307 = vmax.xlane.f32.xlu0 %v296_v1 }
  0xf5   :  { %313 = vmax.xlane.f32.xlu1 %v299_v2 }
  0xf8   :  { %311 = vmax.xlane.f32.xlu0 %v298_v4 }
  0xfc   :  { %315 = vmax.xlane.f32.xlu0 %v300_v5 }
 0x179   :  { %v306_v6 = vpop.xlane.xlu0 %305 }
 0x17a   :  { %v598_v7 = vsub.f32 %v295_v49, %v306_v6  ;;  %v310_v8 = vpop.xlane.xlu1 %309 }
 0x17b   :  { %v601_v10 = vsub.f32 %v297_v54, %v310_v8 }
 0x17c   :  { %v329_v9 = vmul.f32 1.442695, %v598_v7 }
 0x17d   :  { %v302_v11 = vpop.xlane.xlu0 %301  ;;  %v333_v15 = vmul.f32 1.442695, %v601_v10 }
 0x17e   :  { %468 = vpow2.f32 %v329_v9  ;;  %v603_v12 = vsub.f32 %v293_v58, %v302_v11  ;;  %v304_v13 = vpop.xlane.xlu1 %303 }
 0x17f   :  { %v607_v16 = vsub.f32 %v294_v60, %v304_v13 }
 0x180   :  { %v325_v14 = vmul.f32 1.442695, %v603_v12 }
 0x181   :  { %v308_v17 = vpop.xlane.xlu0 %307  ;;  %v327_v22 = vmul.f32 1.442695, %v607_v16 }
 0x182   :  { %470 = vpow2.f32 %v325_v14  ;;  %v609_v18 = vsub.f32 %v296_v1, %v308_v17  ;;  %v314_v19 = vpop.xlane.xlu1 %313 }
 0x183   :  { %v611_v20 = vsub.f32 %v299_v2, %v314_v19  ;;  %472 = vpow2.f32 %v333_v15 }
 0x184   :  { %v331_v21 = vmul.f32 1.442695, %v609_v18 }
 0x185   :  { %v312_v23 = vpop.xlane.xlu0 %311  ;;  %v337_v24 = vmul.f32 1.442695, %v611_v20 }
 0x186   :  { %474 = vpow2.f32 %v331_v21  ;;  %v616_v25 = vsub.f32 %v298_v4, %v312_v23 }
 0x187   :  { %476 = vpow2.f32 %v327_v22 }
 0x188   :  { %v469_v26 = vpop.eup %468  ;;  %478 = vpow2.f32 %v337_v24  ;;  %v335_v28 = vmul.f32 1.442695, %v616_v25 }
 0x189   :  { %v316_v27 = vpop.xlane.xlu0 %315  ;;  %345 = vadd.xlane.f32.xlu1 %v469_v26 }
 0x18a   :  { %v619_v29 = vsub.f32 %v300_v5, %v316_v27  ;;  %480 = vpow2.f32 %v335_v28 }
 0x18c   :  { %v471_v30 = vpop.eup %470  ;;  %v339_v31 = vmul.f32 1.442695, %v619_v29 }
 0x18d   :  { %341 = vadd.xlane.f32.xlu1 %v471_v30  ;;  %v473_v32 = vpop.eup %472 }
 0x18e   :  { %482 = vpow2.f32 %v339_v31 }
 0x190   :  { %v475_v33 = vpop.eup %474 }
 0x191   :  { %347 = vadd.xlane.f32.xlu0 %v475_v33  ;;  %349 = vadd.xlane.f32.xlu1 %v473_v32  ;;  %v477_v34 = vpop.eup %476 }
 0x192   :  { %v479_v35 = vpop.eup %478 }
 0x194   :  { %v481_v36 = vpop.eup %480 }
 0x195   :  { %343 = vadd.xlane.f32.xlu0 %v477_v34  ;;  %353 = vadd.xlane.f32.xlu1 %v479_v35 }
 0x198   :  { %v483_v37 = vpop.eup %482 }
 0x199   :  { %351 = vadd.xlane.f32.xlu0 %v481_v36 }
 0x19d   :  { %355 = vadd.xlane.f32.xlu0 %v483_v37 }
 0x216   :  { %v346_v38 = vpop.xlane.xlu1 %345 }
 0x217   :  { %484 = vlog2.f32 %v346_v38 }
 0x21a   :  { %v342_v39 = vpop.xlane.xlu1 %341 }
 0x21b   :  { %486 = vlog2.f32 %v342_v39 }
 0x21e   :  { %v348_v40 = vpop.xlane.xlu0 %347  ;;  %v350_v41 = vpop.xlane.xlu1 %349 }
 0x21f   :  { %488 = vlog2.f32 %v348_v40 }
 0x220   :  { %490 = vlog2.f32 %v350_v41 }
 0x221   :  { %v485_v42 = vpop.eup %484 }
 0x222   :  { %v362_v43 = vmul.f32 0.6931472, %v485_v42  ;;  %v344_v44 = vpop.xlane.xlu0 %343  ;;  %v354_v45 = vpop.xlane.xlu1 %353 }
 0x223   :  { %492 = vlog2.f32 %v344_v44 }
 0x224   :  { %v375_v46 = vsub.f32 %v598_v7, %v362_v43  ;;  %494 = vlog2.f32 %v354_v45 }
 0x225   :  { %v487_v47 = vpop.eup %486 }
 0x226   :  { %383 = vst [vmem:[%s659_s5 + $0x10] sm:$0xff] %v375_v46  ;;  %v358_v48 = vmul.f32 0.6931472, %v487_v47  ;;  %v352_v49 = vpop.xlane.xlu0 %351 }
 0x227   :  { %496 = vlog2.f32 %v352_v49 }
 0x228   :  { %v373_v50 = vsub.f32 %v603_v12, %v358_v48 }
 0x229   :  { %v489_v51 = vpop.eup %488 }
 0x22a   :  { %v491_v52 = vpop.eup %490  ;;  %381 = vst [vmem:[%s659_s5] sm:$0xff] %v373_v50  ;;  %v364_v53 = vmul.f32 0.6931472, %v489_v51  ;;  %v356_v54 = vpop.xlane.xlu0 %355 }
 0x22b   :  { %v366_v55 = vmul.f32 0.6931472, %v491_v52  ;;  %498 = vlog2.f32 %v356_v54 }
 0x22c   :  { %v376_v56 = vsub.f32 %v609_v18, %v364_v53 }
 0x22d   :  { %v493_v57 = vpop.eup %492  ;;  %v377_v58 = vsub.f32 %v601_v10, %v366_v55 }
 0x22e   :  { %v495_v59 = vpop.eup %494  ;;  %384 = vst [vmem:[%s659_s5 + $0x18] sm:$0xff] %v376_v56  ;;  %v360_v60 = vmul.f32 0.6931472, %v493_v57 }
 0x22f   :  { %385 = vst [vmem:[%s659_s5 + $0x20] sm:$0xff] %v377_v58  ;;  %v370_v61 = vmul.f32 0.6931472, %v495_v59 }
 0x230   :  { %v374_v62 = vsub.f32 %v607_v16, %v360_v60 }
 0x231   :  { %v497_v63 = vpop.eup %496  ;;  %v379_v0 = vsub.f32 %v611_v20, %v370_v61 }
 0x232   :  { %382 = vst [vmem:[%s659_s5 + $0x8] sm:$0xff] %v374_v62  ;;  %v368_v1 = vmul.f32 0.6931472, %v497_v63 }
 0x233   :  { %387 = vst [vmem:[%s659_s5 + $0x30] sm:$0xff] %v379_v0 }
 0x234   :  { %v378_v2 = vsub.f32 %v616_v25, %v368_v1 }
 0x235   :  { %v499_v3 = vpop.eup %498 }
 0x236   :  { %386 = vst [vmem:[%s659_s5 + $0x28] sm:$0xff] %v378_v2  ;;  %v372_v4 = vmul.f32 0.6931472, %v499_v3 }
 0x238   :  { %v380_v5 = vsub.f32 %v619_v29, %v372_v4 }
 0x23a   :  { %388 = vst [vmem:[%s659_s5 + $0x38] sm:$0xff] %v380_v5 }

// kernel: sage_ogb_forward.7
= control target key start
LH: loop header
LB: loop body
LE: loop exit
PB: predicated region body
PF: predicated region fallthrough
CT: control target
= control target key end

     0   :  { %v467_v1 = vmov 0   ;;  %vm105_vm0 = vcmask 523264   ;;  %vm28_vm1 = vcmask 261120   ;;  %v468_v16 = vmov 0.0   ;;  %s631_s1 = inlined_call_operand.vmem [shape: bf16[64,32], index: 1, kind: input, shape index: {}]   ;;  %s632_s0 = inlined_call_operand.vmem [shape: bf16[64,64], index: 0, kind: input, shape index: {}]   ;;  %s633_s3 = inlined_call_operand.vmem [shape: f32[64,1], index: 3, kind: input, shape index: {}]   ;;  %s634_s2 = inlined_call_operand.vmem [shape: bf16[64,32], index: 2, kind: input, shape index: {}]   ;;  %s635_s4 = inlined_call_operand.vmem [shape: f32[1,32], index: 4, kind: input, shape index: {}]   ;;  %s636_s5 = inlined_call_operand.vmem [shape: f32[1,32], index: 5, kind: input, shape index: {}]   ;;  %s637_s6 = inlined_call_operand.vmem [shape: bf16[64,32], index: 6, kind: output, shape index: {}]  }
   0x1   :  { %v459_v0 = vld [vmem:[%s631_s1] sm:$0xff]   ;;  %458 = vset.pattern.permute.xlu1 %v467_v1  ;;  %457 = vset.pattern.permute.xlu0 %v467_v1  ;;  %v460_v2 = vld [vmem:[%s631_s1 + $0x8] sm:$0xff]   ;;  %v461_v3 = vld [vmem:[%s631_s1 + $0x10] sm:$0xff]   ;;  %31 = vst.msk [vmem:[#allocation2 + $0x10] sm:$0xff] %vm28_vm1, %v468_v16  ;;  %vm361_vm2 = vcmask 257024  }
   0x2   :  { %431 = vmatprep.subr.bf16.mxu0 %v459_v0  ;;  %447 = vmatprep.subr.bf16.mxu1 %v459_v0  ;;  %v463_v4 = vld [vmem:[%s632_s0] sm:$0xff]   ;;  %v464_v5 = vld [vmem:[%s632_s0 + $0x10] sm:$0xff]   ;;  %v462_v6 = vld [vmem:[%s631_s1 + $0x18] sm:$0xff]   ;;  %29 = vst.msk [vmem:[#allocation2] sm:$0xff] %vm28_vm1, %v468_v16 }
   0x3   :  { %432 = vmatpush3.bf16.msra.mxu0 %v459_v0  ;;  %451 = vmatpush3.bf16.msra.mxu1 %v459_v0  ;;  %v213_v7 = vld [vmem:[%s633_s3 + $0x10] sm:$0xff]  ;;  %v211_v8 = vld [vmem:[%s633_s3] sm:$0xff]  ;;  %v214_v9 = vld [vmem:[%s633_s3 + $0x18] sm:$0xff]  ;;  %30 = vst.msk [vmem:[#allocation2 + $0x8] sm:$0xff] %vm28_vm1, %v468_v16 }
   0x4   :  { %433 = vmatprep.subr.bf16.mxu0 %v460_v2  ;;  %448 = vmatprep.subr.bf16.mxu1 %v460_v2  ;;  %v212_v10 = vld [vmem:[%s633_s3 + $0x8] sm:$0xff]  ;;  %v466_v12 = vld [vmem:[%s632_s0 + $0x18] sm:$0xff]   ;;  %v215_v14 = vld [vmem:[%s633_s3 + $0x20] sm:$0xff]  ;;  %32 = vst.msk [vmem:[#allocation2 + $0x18] sm:$0xff] %vm28_vm1, %v468_v16 }
   0x5   :  { %439 = vmatprep.mubr.msk.bf16.mxu0 %vm105_vm0, %v463_v4  ;;  %443 = vmatprep.mubr.msk.bf16.mxu1 %vm105_vm0, %v464_v5  ;;  %v465_v11 = vld [vmem:[%s632_s0 + $0x8] sm:$0xff]   ;;  %v218_v15 = vld [vmem:[%s633_s3 + $0x38] sm:$0xff]  ;;  %33 = vst.msk [vmem:[#allocation2 + $0x20] sm:$0xff] %vm28_vm1, %v468_v16  ;;  %34 = vst.msk [vmem:[#allocation2 + $0x28] sm:$0xff] %vm28_vm1, %v468_v16 }
   0x6   :  { %231 = vperm.xlu1 %458, %v213_v7   ;;  %221 = vperm.xlu0 %457, %v211_v8   ;;  %v216_v13 = vld [vmem:[%s633_s3 + $0x28] sm:$0xff]  ;;  %35 = vst.msk [vmem:[#allocation2 + $0x30] sm:$0xff] %vm28_vm1, %v468_v16  ;;  %36 = vst.msk [vmem:[#allocation2 + $0x38] sm:$0xff] %vm28_vm1, %v468_v16  ;;  %v217_v17 = vld [vmem:[%s633_s3 + $0x30] sm:$0xff] }
   0x7   :  { %434 = vmatpush3.bf16.msra.mxu0 %v460_v2  ;;  %452 = vmatpush3.bf16.msra.mxu1 %v460_v2  ;;  %v420_v48 = vld [vmem:[%s634_s2 + $0x8] sm:$0xff]   ;;  %v422_v49 = vld [vmem:[%s634_s2 + $0x18] sm:$0xff]   ;;  %v405_v50 = vld [vmem:[%s634_s2] sm:$0xff]  }
   0x8   :  { %435 = vmatprep.subr.bf16.mxu0 %v461_v3  ;;  %449 = vmatprep.subr.bf16.mxu1 %v461_v3  ;;  %v39_v21 = vld [vmem:[#allocation2 + $0x10] sm:$0xff]  ;;  %v410_v52 = vunpack.c.l.bf16 %v420_v48  ;;  %v418_v53 = vunpack.c.l.bf16 %v422_v49  ;;  %v406_v57 = vunpack.c.l.bf16 %v405_v50  ;;  %v411_v61 = vunpack.c.h.bf16 %v420_v48  ;;  %v386_v2 = vld [vmem:[%s635_s4] ss:$0 sm:$0xff] }
   0x9   :  { %v37_v24 = vld [vmem:[#allocation2] sm:$0xff]  ;;  %v421_v51 = vld [vmem:[%s634_s2 + $0x10] sm:$0xff]   ;;  %v419_v62 = vunpack.c.h.bf16 %v422_v49 }
   0xa   :  { %236 = vperm.xlu1 %458, %v214_v9   ;;  %226 = vperm.xlu0 %457, %v212_v10   ;;  %v38_v34 = vld [vmem:[#allocation2 + $0x8] sm:$0xff]  ;;  %v414_v58 = vunpack.c.l.bf16 %v421_v51  ;;  %v415_v4 = vunpack.c.h.bf16 %v421_v51 }
   0xb   :  { %436 = vmatpush3.bf16.msra.mxu0 %v461_v3  ;;  %453 = vmatpush3.bf16.msra.mxu1 %v461_v3  ;;  %v40_v28 = vld [vmem:[#allocation2 + $0x18] sm:$0xff]  ;;  %v407_v3 = vunpack.c.h.bf16 %v405_v50 }
   0xc   :  { %437 = vmatprep.subr.bf16.mxu0 %v462_v6  ;;  %450 = vmatprep.subr.bf16.mxu1 %v462_v6  ;;  %v41_v25 = vld [vmem:[#allocation2 + $0x20] sm:$0xff]  ;;  %v42_v35 = vld [vmem:[#allocation2 + $0x28] sm:$0xff] }
   0xd   :  { %v43_v22 = vld [vmem:[#allocation2 + $0x30] sm:$0xff]  ;;  %v44_v29 = vld [vmem:[#allocation2 + $0x38] sm:$0xff] }
   0xe   :  { %246 = vperm.xlu1 %458, %v216_v13   ;;  %241 = vperm.xlu0 %457, %v215_v14  }
   0xf   :  { %438 = vmatpush3.bf16.msra.mxu0 %v462_v6  ;;  %454 = vmatpush3.bf16.msra.mxu1 %v462_v6 }
  0x12   :  { %440 = vmatmul.mubr.msk.bf16.vlgmr.msra.gmra.mrb[0].mxu0 %vm105_vm0, %v465_v11  ;;  %444 = vmatmul.mubr.msk.bf16.vlgmr.msra.gmra.mrb[0].mxu1 %vm105_vm0, %v466_v12 }
  0x13   :  { %256 = vperm.xlu1 %458, %v218_v15   ;;  %251 = vperm.xlu0 %457, %v217_v17   ;;  %v387_v15 = vld [vmem:[%s636_s5] ss:$0 sm:$0xff] }
  0x85   :  { %v564_v18 = vpop.permute.xlu0 %221  ;;  %v232_v19 = vpop.permute.xlu1 %231 }
  0x89   :  { %v566_v20 = vpop.permute.xlu0 %226  ;;  %v568_v23 = vpop.permute.xlu1 %236 }
  0x8d   :  { %v242_v44 = vpop.permute.xlu0 %241  ;;  %v247_v47 = vpop.permute.xlu1 %246 }
  0x92   :  { %v252_v54 = vpop.permute.xlu0 %251  ;;  %v257_v1 = vpop.permute.xlu1 %256 }
  0xe5   :  { %v441_v26 = vpop.f32.mrb[0].mxu0  ;;  %v445_v27 = vpop.f32.mrb[0].mxu1 }
  0xe6   :  { %v185_v30 = vadd.f32 %v441_v26, %v39_v21  ;;  %v189_v31 = vadd.f32 %v445_v27, %v43_v22  ;;  %v152_v32 = vpop.f32.mrb[1].mxu0  ;;  %v168_v33 = vpop.f32.mrb[1].mxu1 }
  0xe7   :  { %v183_v36 = vadd.f32 %v152_v32, %v37_v24  ;;  %v187_v37 = vadd.f32 %v168_v33, %v41_v25  ;;  %v442_v38 = vpop.f32.mrb[2].mxu0  ;;  %v446_v39 = vpop.f32.mrb[2].mxu1 }
  0xe8   :  { %194 = vst.msk [vmem:[#allocation2 + $0x10] sm:$0xff] %vm28_vm1, %v185_v30  ;;  %198 = vst.msk [vmem:[#allocation2 + $0x30] sm:$0xff] %vm28_vm1, %v189_v31  ;;  %v186_v40 = vadd.f32 %v442_v38, %v40_v28  ;;  %v190_v41 = vadd.f32 %v446_v39, %v44_v29  ;;  %v155_v42 = vpop.f32.mrb[3].mxu0  ;;  %v171_v43 = vpop.f32.mrb[3].mxu1 }
  0xe9   :  { %192 = vst.msk [vmem:[#allocation2] sm:$0xff] %vm28_vm1, %v183_v36  ;;  %196 = vst.msk [vmem:[#allocation2 + $0x20] sm:$0xff] %vm28_vm1, %v187_v37  ;;  %v184_v45 = vadd.f32 %v155_v42, %v38_v34  ;;  %v188_v46 = vadd.f32 %v171_v43, %v42_v35 }
  0xea   :  { %195 = vst.msk [vmem:[#allocation2 + $0x18] sm:$0xff] %vm28_vm1, %v186_v40  ;;  %199 = vst.msk [vmem:[#allocation2 + $0x38] sm:$0xff] %vm28_vm1, %v190_v41 }
  0xeb   :  { %193 = vst.msk [vmem:[#allocation2 + $0x8] sm:$0xff] %vm28_vm1, %v184_v45  ;;  %197 = vst.msk [vmem:[#allocation2 + $0x28] sm:$0xff] %vm28_vm1, %v188_v46 }
  0xef   :  { %v205_v55 = vld [vmem:[#allocation2 + $0x10] sm:$0xff] }
  0xf0   :  { %v209_v56 = vld [vmem:[#allocation2 + $0x30] sm:$0xff]  ;;  %v261_v59 = vmul.f32 %v232_v19, %v205_v55  ;;  %v203_v63 = vld [vmem:[#allocation2] sm:$0xff] }
  0xf1   :  { %v265_v60 = vmul.f32 %v252_v54, %v209_v56  ;;  %v207_v0 = vld [vmem:[#allocation2 + $0x20] sm:$0xff]  ;;  %v259_v5 = vmul.f32 %v564_v18, %v203_v63  ;;  %v206_v7 = vld [vmem:[#allocation2 + $0x18] sm:$0xff] }
  0xf2   :  { %v263_v6 = vmul.f32 %v242_v44, %v207_v0  ;;  %v210_v8 = vld [vmem:[#allocation2 + $0x38] sm:$0xff]  ;;  %v285_v9 = vadd.f32 %v410_v52, %v261_v59  ;;  %v262_v11 = vmul.f32 %v568_v23, %v206_v7  ;;  %v204_v13 = vld [vmem:[#allocation2 + $0x8] sm:$0xff] }
  0xf3   :  { %v289_v10 = vadd.f32 %v418_v53, %v265_v60  ;;  %v266_v12 = vmul.f32 %v257_v1, %v210_v8  ;;  %v208_v14 = vld [vmem:[#allocation2 + $0x28] sm:$0xff]  ;;  %v283_v16 = vadd.f32 %v406_v57, %v259_v5  ;;  %v260_v19 = vmul.f32 %v566_v20, %v204_v13 }
  0xf4   :  { %v287_v17 = vadd.f32 %v414_v58, %v263_v6  ;;  %v264_v21 = vmul.f32 %v247_v47, %v208_v14  ;;  %v300_v18 = vmul.f32 %v386_v2, %v285_v9  ;;  %v286_v24 = vadd.f32 %v411_v61, %v262_v11 }
  0xf5   :  { %v304_v22 = vmul.f32 %v386_v2, %v289_v10  ;;  %v290_v25 = vadd.f32 %v419_v62, %v266_v12  ;;  %v298_v26 = vmul.f32 %v386_v2, %v283_v16  ;;  %v284_v28 = vadd.f32 %v407_v3, %v260_v19 }
  0xf6   :  { %v302_v27 = vmul.f32 %v386_v2, %v287_v17  ;;  %v288_v23 = vadd.f32 %v415_v4, %v264_v21  ;;  %v315_v29 = vadd.f32 %v387_v15, %v300_v18  ;;  %v301_v31 = vmul.f32 %v386_v2, %v286_v24 }
  0xf7   :  { %v319_v30 = vadd.f32 %v387_v15, %v304_v22  ;;  %v305_v32 = vmul.f32 %v386_v2, %v290_v25  ;;  %v313_v33 = vadd.f32 %v387_v15, %v298_v26  ;;  %v299_v35 = vmul.f32 %v386_v2, %v284_v28 }
  0xf8   :  { %v317_v34 = vadd.f32 %v387_v15, %v302_v27  ;;  %v303_v36 = vmul.f32 %v386_v2, %v288_v23  ;;  %v323_v37 = vmax.f32 %v315_v29, 0.0  ;;  %v316_v20 = vadd.f32 %v387_v15, %v301_v31 }
  0xf9   :  { %v327_v38 = vmax.f32 %v319_v30, 0.0  ;;  %v320_v39 = vadd.f32 %v387_v15, %v305_v32  ;;  %v321_v40 = vmax.f32 %v313_v33, 0.0  ;;  %v314_v42 = vadd.f32 %v387_v15, %v299_v35 }
  0xfa   :  { %v325_v41 = vmax.f32 %v317_v34, 0.0  ;;  %v318_v43 = vadd.f32 %v387_v15, %v303_v36  ;;  %v398_v44 = vpack.c.bf16 %v323_v37, %v323_v37  ;;  %v324_v46 = vmax.f32 %v316_v20, 0.0 }
  0xfb   :  { %v402_v45 = vpack.c.bf16 %v327_v38, %v327_v38  ;;  %v328_v47 = vmax.f32 %v320_v39, 0.0  ;;  %v396_v48 = vpack.c.bf16 %v321_v40, %v321_v40  ;;  %v322_v50 = vmax.f32 %v314_v42, 0.0 }
  0xfc   :  { %v400_v49 = vpack.c.bf16 %v325_v41, %v325_v41  ;;  %v326_v51 = vmax.f32 %v318_v43, 0.0  ;;  %364 = vst.msk [vmem:[%s637_s6 + $0x8] sm:$0xf] %vm361_vm2, %v398_v44  ;;  %v399_v52 = vpack.c.bf16 %v324_v46, %v324_v46 }
  0xfd   :  { %368 = vst.msk [vmem:[%s637_s6 + $0x18] sm:$0xf] %vm361_vm2, %v402_v45  ;;  %v403_v53 = vpack.c.bf16 %v328_v47, %v328_v47  ;;  %362 = vst.msk [vmem:[%s637_s6] sm:$0xf] %vm361_vm2, %v396_v48  ;;  %v397_v54 = vpack.c.bf16 %v322_v50, %v322_v50 }
  0xfe   :  { %366 = vst.msk [vmem:[%s637_s6 + $0x10] sm:$0xf] %vm361_vm2, %v400_v49  ;;  %v401_v55 = vpack.c.bf16 %v326_v51, %v326_v51  ;;  %365 = vst.msk [vmem:[%s637_s6 + $0xc] sm:$0xf] %vm361_vm2, %v399_v52 }
  0xff   :  { %369 = vst.msk [vmem:[%s637_s6 + $0x1c] sm:$0xf] %vm361_vm2, %v403_v53  ;;  %363 = vst.msk [vmem:[%s637_s6 + $0x4] sm:$0xf] %vm361_vm2, %v397_v54 }
 0x100   :  { %367 = vst.msk [vmem:[%s637_s6 + $0x14] sm:$0xf] %vm361_vm2, %v401_v55 }

</bundles_post_ra>
